<compile_context>
chip_gen: v6e
topology: v6e:2x2x1
jax: 0.10.0
libtpu: 0.0.40
codegen_flags: <defaults>
</compile_context>

<pallas_src>
import jax
import jax.numpy as jnp
from jax.experimental import pallas as pl
from jax.experimental.pallas import tpu as pltpu

IN_DIM = 28
H1 = 32
H2 = 32
OUT_DIM = 1
LEAKY_SLOPE = 0.01  # PyTorch nn.LeakyReLU default negative_slope


def _leaky_relu(x):
    return jnp.where(x >= 0, x, LEAKY_SLOPE * x)


def _round_up(n, m):
    return ((n + m - 1) // m) * m


def tnn_mlp_kernel(x_ref, w0_ref, w1_ref, w2t_ref, o_ref):
    """Fused MLP on one batch tile, batch on the lane axis.

    x_ref  : (tb, 28)  input rows (batch tile)
    w0_ref : (32, 28)  layer-0 weight, PyTorch [out, in] layout
    w1_ref : (32, 32)  layer-1 weight, PyTorch [out, in] layout
    w2t_ref: (32, 1)   layer-2 weight transposed (column vector, f32)
    o_ref  : (1, tb)   sigmoid outputs, batch on lanes (lane-dense store)
    """
    # In-kernel cast (no extra wrapper-side HBM pass over x).
    x = x_ref[...].astype(w0_ref.dtype)                       # (tb, 28)

    # h^T = W0 @ x^T : contract both feature axes so the batch tile lands on
    # the MXU lane/N axis.  (trans_b matmul, like q @ k^T in flash attention.)
    h = jax.lax.dot_general(
        w0_ref[...], x, (((1,), (1,)), ((), ())),
        preferred_element_type=jnp.float32)                   # (32, tb) f32
    h = _leaky_relu(h)

    # h2^T = W1 @ h^T  (standard matmul; batch stays on lanes).
    h2 = jnp.dot(w1_ref[...], h.astype(w1_ref.dtype),
                 preferred_element_type=jnp.float32)          # (32, tb) f32
    h2 = _leaky_relu(h2)

    # Final Linear(32 -> 1): broadcast multiply (VPU) + sublane reduction (XLU)
    # instead of an M=1 MXU matmul.
    z = jnp.sum(h2 * w2t_ref[...], axis=0, keepdims=True)     # (1, tb) f32

    # Exact sigmoid.  (pl.reciprocal(approx=True) would move the divide onto
    # the EUP, but z is a single (1, tb) vector so the win is negligible and
    # we keep full f32 accuracy for the tight tolerance check.)
    o_ref[...] = (1.0 / (1.0 + jnp.exp(-z))).astype(o_ref.dtype)


def tnn_classifier_forward(x, w0, w1, w2, *, block_b=4096,
                           compute_dtype=jnp.float32):
    """Forward pass of TNN_Classifier (kind_layers=32).

    x : [B, 28] (f32 or bf16; cast to compute_dtype happens inside the kernel)
    w0: [32, 28], w1: [32, 32], w2: [1, 32]  (PyTorch nn.Linear [out, in])
    block_b: rows per batch tile (sweep 4K-32K on large batches; raise
             vmem_limit_bytes past ~8K rows f32 on v5e).
    compute_dtype: MXU dtype for x/W0/W1 (f32 or bf16; accumulation is f32.
             The HBM-read win from bf16 only materializes if x arrives bf16.)
    """
    B = x.shape[0]
    assert x.shape[1] == IN_DIM

    if B <= block_b:
        tb = B                                   # single full-array block
    else:
        tb = _round_up(min(block_b, B), 128)     # lane-dense output blocks
    grid = (pl.cdiv(B, tb),)

    # Weight glue (tiny arrays): keep PyTorch [out, in] layout for W0/W1 since
    # the kernel multiplies from the left; only W2 is transposed to a column.
    w0c = w0.astype(compute_dtype)               # [32, 28]
    w1c = w1.astype(compute_dtype)               # [32, 32]
    w2t = w2.T.astype(jnp.float32)               # [32, 1]

    out = pl.pallas_call(
        tnn_mlp_kernel,
        out_shape=jax.ShapeDtypeStruct((1, B), jnp.float32),
        grid=grid,
        in_specs=[
            pl.BlockSpec((tb, IN_DIM), lambda i: (i, 0)),
            # Constant index maps -> weights stay VMEM-resident across tiles.
            pl.BlockSpec((H1, IN_DIM), lambda i: (0, 0)),
            pl.BlockSpec((H2, H1), lambda i: (0, 0)),
            pl.BlockSpec((H2, OUT_DIM), lambda i: (0, 0)),
        ],
        out_specs=pl.BlockSpec((1, tb), lambda i: (0, i)),
        compiler_params=pltpu.CompilerParams(
            # Batch tiles are independent -> shard across TensorCores (v7x).
            dimension_semantics=("parallel",),
        ),
    )(x, w0c, w1c, w2t)

    # (1, B) -> (B, 1) to match the PyTorch module's output shape.
    return out.reshape(B, OUT_DIM)


def build_params():
    """Deterministic parameter init mimicking TNN_Classifier.__init__ (kind_layers=32)."""
    # Synthetic, normalized "feature importances" (stand-in for the fitted XGBClassifier).
    fi = jnp.arange(1, IN_DIM + 1, dtype=jnp.float32)
    fi = fi / jnp.sum(fi)                                   # [28], sums to 1
    # base_tree(): column_stack importances -> temp [28, 32]; layer-0 weight = temp.T [32, 28]
    w0 = jnp.tile(fi[:, None], (1, H1)).T                   # [32, 28]

    key = jax.random.PRNGKey(0)
    k1, k2 = jax.random.split(key)
    # Remaining Linear layers: Kaiming-uniform-style bounds (torch.nn.Linear default).
    bound1 = 1.0 / jnp.sqrt(jnp.float32(H1))
    bound2 = 1.0 / jnp.sqrt(jnp.float32(H2))
    w1 = jax.random.uniform(k1, (H2, H1), jnp.float32, -bound1, bound1)       # [32, 32]
    w2 = jax.random.uniform(k2, (OUT_DIM, H2), jnp.float32, -bound2, bound2)  # [1, 32]
    return w0, w1, w2


def reference_forward(x, w0, w1, w2):
    h = _leaky_relu(x @ w0.T)
    h = _leaky_relu(h @ w1.T)
    return jax.nn.sigmoid(h @ w2.T)


if __name__ == "__main__":
    w0, w1, w2 = build_params()

    # --- small single-block case (B=8, grid=1), f32 path, tight tolerance ---
    B = 8
    x = jax.random.normal(jax.random.PRNGKey(0), (B, IN_DIM), dtype=jnp.float32)
    out = jax.block_until_ready(tnn_classifier_forward(x, w0, w1, w2))
    ref = reference_forward(x, w0, w1, w2)
    assert out.shape == (B, OUT_DIM)
    assert jnp.allclose(out, ref, atol=1e-5, rtol=1e-5), "f32 mismatch vs reference"

    # --- multi-tile case with a ragged tail (B=1000, tb=256 -> grid=4, last block partial) ---
    B2 = 1000
    x2 = jax.random.normal(jax.random.PRNGKey(1), (B2, IN_DIM), dtype=jnp.float32)
    out2 = jax.block_until_ready(
        tnn_classifier_forward(x2, w0, w1, w2, block_b=256))
    ref2 = reference_forward(x2, w0, w1, w2)
    assert out2.shape == (B2, OUT_DIM)
    assert jnp.allclose(out2, ref2, atol=1e-5, rtol=1e-5), "tiled f32 mismatch vs reference"

    # --- bf16 MXU path (looser tolerance is quantization, not a bug; the
    #     activation re-cast before the second matmul is intentional) ---
    out3 = jax.block_until_ready(
        tnn_classifier_forward(x2, w0, w1, w2, block_b=256,
                               compute_dtype=jnp.bfloat16))
    assert out3.shape == (B2, OUT_DIM)
    assert jnp.allclose(out3, ref2, atol=2e-2, rtol=2e-2), "bf16 mismatch vs reference"

    print("KERNEL_OK")
</pallas_src>

<mosaic_0001>
module attributes {stable_mosaic.version = 11 : i64} {
  func.func @tnn_mlp_kernel(%arg0: i32, %arg1: memref<8x28xf32, #tpu.memory_space<vmem>>, %arg2: memref<32x28xf32, #tpu.memory_space<vmem>>, %arg3: memref<32x32xf32, #tpu.memory_space<vmem>>, %arg4: memref<32x1xf32, #tpu.memory_space<vmem>>, %arg5: memref<1x8xf32, #tpu.memory_space<vmem>>) attributes {dimension_semantics = [#tpu.dimension_semantics<parallel>], iteration_bounds = array<i64: 1>, scalar_prefetch = 0 : i64, scratch_operands = 0 : i64, tpu.core_type = #tpu.core_type<tc>, window_params = [{transform_indices = @transform_0, window_bounds = array<i64: 8, 28>}, {pipeline_mode = #tpu.pipeline_mode<synchronous>, transform_indices = @transform_1, window_bounds = array<i64: 32, 28>}, {pipeline_mode = #tpu.pipeline_mode<synchronous>, transform_indices = @transform_2, window_bounds = array<i64: 32, 32>}, {pipeline_mode = #tpu.pipeline_mode<synchronous>, transform_indices = @transform_3, window_bounds = array<i64: 32, 1>}, {transform_indices = @transform_4, window_bounds = array<i64: 1, 8>}]} {
    %c0 = arith.constant 0 : index
    %c0_0 = arith.constant 0 : index
    %0 = vector.load %arg1[%c0, %c0_0] : memref<8x28xf32, #tpu.memory_space<vmem>>, vector<8x28xf32>
    %c0_1 = arith.constant 0 : index
    %c0_2 = arith.constant 0 : index
    %1 = vector.load %arg2[%c0_1, %c0_2] : memref<32x28xf32, #tpu.memory_space<vmem>>, vector<32x28xf32>
    %cst = arith.constant dense<0.000000e+00> : vector<32x8xf32>
    %2 = tpu.matmul %1, %0, %cst {dimension_numbers = #tpu.dot_dimension_numbers<[1], [1], [0], [0], [0, 0, 1, 0], [], []>} : vector<32x28xf32>, vector<8x28xf32>, vector<32x8xf32> -> vector<32x8xf32>
    %cst_3 = arith.constant 0.000000e+00 : f32
    %3 = vector.broadcast %cst_3 : f32 to vector<32x8xf32>
    %4 = arith.cmpf oge, %2, %3 : vector<32x8xf32>
    %cst_4 = arith.constant 0.00999999977 : f32
    %5 = vector.broadcast %cst_4 : f32 to vector<32x8xf32>
    %6 = arith.mulf %5, %2 : vector<32x8xf32>
    %7 = arith.select %4, %2, %6 : vector<32x8xi1>, vector<32x8xf32>
    %c0_5 = arith.constant 0 : index
    %c0_6 = arith.constant 0 : index
    %8 = vector.load %arg3[%c0_5, %c0_6] : memref<32x32xf32, #tpu.memory_space<vmem>>, vector<32x32xf32>
    %cst_7 = arith.constant dense<0.000000e+00> : vector<32x8xf32>
    %9 = tpu.matmul %8, %7, %cst_7 {dimension_numbers = #tpu.dot_dimension_numbers<[1], [0], [0], [1], [0, 0, 1, 1], [], []>} : vector<32x32xf32>, vector<32x8xf32>, vector<32x8xf32> -> vector<32x8xf32>
    %cst_8 = arith.constant 0.000000e+00 : f32
    %10 = vector.broadcast %cst_8 : f32 to vector<32x8xf32>
    %11 = arith.cmpf oge, %9, %10 : vector<32x8xf32>
    %cst_9 = arith.constant 0.00999999977 : f32
    %12 = vector.broadcast %cst_9 : f32 to vector<32x8xf32>
    %13 = arith.mulf %12, %9 : vector<32x8xf32>
    %14 = arith.select %11, %9, %13 : vector<32x8xi1>, vector<32x8xf32>
    %c0_10 = arith.constant 0 : index
    %c0_11 = arith.constant 0 : index
    %15 = vector.load %arg4[%c0_10, %c0_11] : memref<32x1xf32, #tpu.memory_space<vmem>>, vector<32x1xf32>
    %16 = vector.broadcast %15 : vector<32x1xf32> to vector<32x8xf32>
    %17 = arith.mulf %14, %16 : vector<32x8xf32>
    %cst_12 = arith.constant dense<0.000000e+00> : vector<8xf32>
    %18 = vector.multi_reduction <add>, %17, %cst_12 [0] : vector<32x8xf32> to vector<8xf32>
    %19 = vector.shape_cast %18 : vector<8xf32> to vector<1x8xf32>
    %cst_13 = arith.constant 0.000000e+00 : f32
    %20 = vector.broadcast %cst_13 : f32 to vector<1x8xf32>
    %21 = arith.subf %20, %19 : vector<1x8xf32>
    %22 = math.exp %21 : vector<1x8xf32>
    %cst_14 = arith.constant 1.000000e+00 : f32
    %23 = vector.broadcast %cst_14 : f32 to vector<1x8xf32>
    %24 = arith.addf %23, %22 : vector<1x8xf32>
    %cst_15 = arith.constant 1.000000e+00 : f32
    %25 = vector.broadcast %cst_15 : f32 to vector<1x8xf32>
    %26 = arith.divf %25, %24 : vector<1x8xf32>
    %c0_16 = arith.constant 0 : index
    %c0_17 = arith.constant 0 : index
    %27 = vector.load %arg5[%c0_16, %c0_17] : memref<1x8xf32, #tpu.memory_space<vmem>>, vector<1x8xf32>
    tpu.vector_store %arg5[%c0_16, %c0_17], %26 {strides = array<i32>} : memref<1x8xf32, #tpu.memory_space<vmem>>, vector<1x8xf32>,
    return
  }
  func.func @transform_0(%arg0: i32) -> (i32, i32) {
    %c0_i32 = arith.constant 0 : i32
    %c0_i32_0 = arith.constant 0 : i32
    return %arg0, %c0_i32 : i32, i32
  }
  func.func @transform_1(%arg0: i32) -> (i32, i32) {
    %c0_i32 = arith.constant 0 : i32
    %c0_i32_0 = arith.constant 0 : i32
    %c0_i32_1 = arith.constant 0 : i32
    return %c0_i32, %c0_i32_0 : i32, i32
  }
  func.func @transform_2(%arg0: i32) -> (i32, i32) {
    %c0_i32 = arith.constant 0 : i32
    %c0_i32_0 = arith.constant 0 : i32
    %c0_i32_1 = arith.constant 0 : i32
    return %c0_i32, %c0_i32_0 : i32, i32
  }
  func.func @transform_3(%arg0: i32) -> (i32, i32) {
    %c0_i32 = arith.constant 0 : i32
    %c0_i32_0 = arith.constant 0 : i32
    %c0_i32_1 = arith.constant 0 : i32
    return %c0_i32, %c0_i32_0 : i32, i32
  }
  func.func @transform_4(%arg0: i32) -> (i32, i32) {
    %c0_i32 = arith.constant 0 : i32
    %c0_i32_0 = arith.constant 0 : i32
    return %c0_i32, %arg0 : i32, i32
  }
}

</mosaic_0001>

<bundles_post_ra>
// kernel: tpu_custom_call.1
= control target key start
LH: loop header
LB: loop body
LE: loop exit
PB: predicated region body
PF: predicated region fallthrough
CT: control target
= control target key end

     0   :  { %9 = vsyncpa [#allocation3], 0  ;;  %s532_s0 = inlined_call_operand.hbm [shape: f32[8,28], index: 0, kind: input, shape index: {}]   ;;  %s533_s1 = inlined_call_operand.vmem [shape: f32[32,28], index: 1, kind: input, shape index: {}]   ;;  %s534_s2 = inlined_call_operand.hbm [shape: f32[32,32], index: 2, kind: input, shape index: {}]   ;;  %s535_s3 = inlined_call_operand.vmem [shape: f32[32,1], index: 3, kind: input, shape index: {}]   ;;  %s536_s4 = inlined_call_operand.hbm [shape: f32[1,8], index: 4, kind: output, shape index: {}]  }
   0x1   :  { %10 = vsyncpa [#allocation6], 0 }
   0x2   :  { %11 = vsyncpa [#allocation4], 0  ;;  %s464_s15 = smov [#allocation2]   ;;  %s465_s17 = smov [#allocation5]  }
   0x3   :  { %s18_s16 = sshll.u32 %s464_s15, 4  ;;  %s29_s18 = sshll.u32 %s465_s17, 4  ;;  %s19_s16 = int_to_ptr.vmem [resolvable:$true] %s18_s16  ;;  %s30_s18 = int_to_ptr.vmem [resolvable:$true] %s29_s18 }
   0x4   :  { %s406_s19 = scalar_lea.vmem %s19_s16, 128  ;;  %p411_p1 = scmp.lt.s32.totalorder %s19_s16, %s19_s16 }
   0x5   :  { %p407_p0 = scmp.ne.s32.totalorder %s19_s16, %s406_s19  ;;  %p412_p2 = scmp.lt.s32.totalorder %s406_s19, %s406_s19 }
   0x7   :  { %p413_p3 = por %p412_p2, %p411_p1 }
   0x9   :  { %p414_p4 = pnand %p413_p3, %p407_p0 }
   0xb   :  { %417 = shalt.err (!%p414_p4)
}
   0xc   :  { %21 = dma.hbm_to_vmem [thread:$0]  %s532_s0, 128, %s19_s16, [#allocation3]  }
   0xd   :  { %s426_s22 = scalar_lea.vmem %s30_s18, 512  ;;  %p431_p6 = scmp.lt.s32.totalorder %s30_s18, %s30_s18 }
   0xe   :  { %p427_p5 = scmp.ne.s32.totalorder %s30_s18, %s426_s22  ;;  %p432_p7 = scmp.lt.s32.totalorder %s426_s22, %s426_s22 }
  0x10   :  { %p433_p8 = por %p432_p7, %p431_p6 }
  0x12   :  { %p434_p9 = pnand %p433_p8, %p427_p5 }
  0x14   :  { %437 = shalt.err (!%p434_p9)
}
  0x15   :  { %s466_s23 = smov 128   ;;  %s467_s24 = smov 8  }
  0x16   :  { %35 = dma.hbm_to_vmem [thread:$0]  %s534_s2, 512, %s30_s18, [#allocation6], %s466_s23, %s466_s23, %s467_s24  }
  0x17   :  { %458 = dma.done.wait [#allocation3], 128  }
  0x18   :  { %459 = vsyncadd [#allocation3], 4294967168 }
  0x19   :  { %460 = dma.done.wait [#allocation6], 512  }
  0x1a   :  { %461 = vsyncadd [#allocation6], 4294966784  ;;  %vm49_vm0 = vcmask 228352   ;;  %v44_v0 = vld [vmem:[#allocation2] sm:$0xff]  ;;  %v46_v2 = vld [vmem:[%s533_s1 + $0x8] sm:$0xff]  ;;  %vm166_vm1 = vcmask 261120  }
  0x1b   :  { %v45_v1 = vld [vmem:[%s533_s1] sm:$0xff]  ;;  %364 = vmatprep.subr.msk.mxu0 %vm49_vm0, %v44_v0  ;;  %v47_v3 = vld [vmem:[%s533_s1 + $0x10] sm:$0xff]  ;;  %v48_v4 = vld [vmem:[%s533_s1 + $0x18] sm:$0xff]  ;;  %v468_v8 = vmov 0   ;;  %vm304_vm9 = vcmask 64512   ;;  %vm324_vm11 = vcmask 57344  }
  0x1c   :  { %366 = vmatprep.mubr.msk.f32.mxu0 %vm49_vm0, %v45_v1  ;;  %365 = vmatpush3.xpose.msk.msra.mxu0 %vm49_vm0, %v44_v0  ;;  %v162_v5 = vld [vmem:[#allocation5] sm:$0xff]  ;;  %v276_v6 = vld [vmem:[%s535_s3] sm:$0xff]  ;;  %v278_v7 = vld [vmem:[%s535_s3 + $0x10] sm:$0xff] }
  0x1d   :  { %380 = vmatprep.mubr.msk.f32.mxu1 %vm166_vm1, %v162_v5  ;;  %392 = vset.pattern.permute.xlu0 %v468_v8  ;;  %v277_v9 = vld [vmem:[%s535_s3 + $0x8] sm:$0xff]  ;;  %v279_v10 = vld [vmem:[%s535_s3 + $0x18] sm:$0xff]  ;;  %v163_v23 = vld [vmem:[#allocation5 + $0x8] sm:$0xff]  ;;  %s469_s3 = smov [#allocation7]  }
  0x1e   :  { %393 = vset.pattern.permute.xlu1 %v468_v8  ;;  %282 = vperm.xlu0 %392, %v276_v6   ;;  %v164_v24 = vld [vmem:[#allocation5 + $0x10] sm:$0xff]  ;;  %v165_v25 = vld [vmem:[#allocation5 + $0x18] sm:$0xff]  ;;  %s332_s14 = sshll.u32 %s469_s3, 4  ;;  %s333_s14 = int_to_ptr.vmem [resolvable:$true] %s332_s14 }
  0x1f   :  { %367 = vmatmul.mubr.msk.f32.vlgmr.msra.gmra.mxu0 %vm49_vm0, %v46_v2  ;;  %292 = vperm.xlu1 %393, %v278_v7   ;;  %s438_s15 = scalar_lea.vmem %s333_s14, 16  ;;  %s442_s16 = scalar_lea.vmem %s333_s14, 32 }
  0x20   :  { %369 = vmatprep.mubr.msk.f32.mxu0 %vm49_vm0, %v47_v3  ;;  %p439_p10 = scmp.ne.s32.totalorder %s333_s14, %s438_s15  ;;  %p443_p11 = scmp.lt.s32.totalorder %s333_s14, %s333_s14 }
  0x21   :  { %p444_p12 = scmp.lt.s32.totalorder %s442_s16, %s438_s15 }
  0x22   :  { %287 = vperm.xlu0 %392, %v277_v9  }
  0x23   :  { %370 = vmatmul.mubr.msk.f32.gmra.mxu0 %vm49_vm0, %v48_v4  ;;  %297 = vperm.xlu1 %393, %v279_v10   ;;  %p445_p13 = por %p444_p12, %p443_p11 }
  0x25   :  { %p446_p0 = pnand %p445_p13, %p439_p10 }
  0x99   :  { %v283_v26 = vpop.permute.xlu0 %282 }
  0x9a   :  { %v293_v29 = vpop.permute.xlu1 %292 }
  0x9d   :  { %v288_v32 = vpop.permute.xlu0 %287 }
  0x9e   :  { %v298_v41 = vpop.permute.xlu1 %297 }
  0xdf   :  { %v368_v11 = vpop.f32.mrf.mxu0 }
  0xe0   :  { %v155_v16 = vmul.f32 0.01, %v368_v11  ;;  %vm151_vm4 = vcmp.ge.f32.partialorder %v368_v11, 0.0 }
  0xe1   :  { %v131_v12 = vpop.f32.mrf.mxu0 }
  0xe2   :  { %v154_v19 = vmul.f32 0.01, %v131_v12  ;;  %vm150_vm5 = vcmp.ge.f32.partialorder %v131_v12, 0.0  ;;  %v159_v21 = vsel %vm151_vm4, %v368_v11, %v155_v16 }
  0xe3   :  { %v371_v13 = vpop.f32.mrf.mxu0 }
  0xe4   :  { %v157_v14 = vmul.f32 0.01, %v371_v13  ;;  %vm153_vm2 = vcmp.ge.f32.partialorder %v371_v13, 0.0  ;;  %v158_v22 = vsel %vm150_vm5, %v131_v12, %v154_v19 }
  0xe5   :  { %v141_v15 = vpop.f32.mrf.mxu0 }
  0xe6   :  { %vm152_vm3 = vcmp.ge.f32.partialorder %v141_v15, 0.0  ;;  %v156_v17 = vmul.f32 0.01, %v141_v15  ;;  %v161_v18 = vsel %vm153_vm2, %v371_v13, %v157_v14 }
  0xe7   :  { %372 = vmatprep.subr.mxu1 %v161_v18 }
  0xe8   :  { %373 = vmatpush3.msra.mxu1 %v161_v18  ;;  %v160_v20 = vsel %vm152_vm3, %v141_v15, %v156_v17 }
  0xe9   :  { %374 = vmatprep.subr.mxu1 %v160_v20 }
  0xea   :  { %375 = vmatpush3.msra.mxu1 %v160_v20 }
  0xeb   :  { %376 = vmatprep.subr.mxu1 %v159_v21 }
  0xec   :  { %377 = vmatpush3.msra.mxu1 %v159_v21 }
  0xed   :  { %378 = vmatprep.subr.mxu1 %v158_v22 }
  0xee   :  { %379 = vmatpush3.msra.mxu1 %v158_v22 }
  0xef   :  { %381 = vmatmul.mubr.msk.f32.vlgmr.msra.gmra.mxu1 %vm166_vm1, %v163_v23 }
  0xf0   :  { %383 = vmatprep.mubr.msk.f32.mxu1 %vm166_vm1, %v164_v24 }
  0xf3   :  { %384 = vmatmul.mubr.msk.f32.gmra.mxu1 %vm166_vm1, %v165_v25 }
 0x1af   :  { %v382_v27 = vpop.f32.mrf.mxu1 }
 0x1b0   :  { %vm265_vm6 = vcmp.ge.f32.partialorder %v382_v27, 0.0  ;;  %v269_v28 = vmul.f32 0.01, %v382_v27 }
 0x1b1   :  { %v245_v30 = vpop.f32.mrf.mxu1 }
 0x1b2   :  { %vm264_vm7 = vcmp.ge.f32.partialorder %v245_v30, 0.0  ;;  %v268_v31 = vmul.f32 0.01, %v245_v30  ;;  %v273_v33 = vsel %vm265_vm6, %v382_v27, %v269_v28 }
 0x1b3   :  { %v385_v34 = vpop.f32.mrf.mxu1  ;;  %v301_v38 = vmul.f32 %v288_v32, %v273_v33 }
 0x1b4   :  { %v272_v35 = vsel %vm264_vm7, %v245_v30, %v268_v31  ;;  %vm267_vm8 = vcmp.ge.f32.partialorder %v385_v34, 0.0  ;;  %v271_v36 = vmul.f32 0.01, %v385_v34 }
 0x1b5   :  { %v300_v37 = vmul.f32 %v283_v26, %v272_v35  ;;  %v255_v39 = vpop.f32.mrf.mxu1  ;;  %v306_v45 = vsel %vm304_vm9, %v301_v38, 0.0 }
 0x1b6   :  { %vm266_vm10 = vcmp.ge.f32.partialorder %v255_v39, 0.0  ;;  %v270_v40 = vmul.f32 0.01, %v255_v39  ;;  %v275_v42 = vsel %vm267_vm8, %v385_v34, %v271_v36 }
 0x1b7   :  { %v305_v43 = vsel %vm304_vm9, %v300_v37, 0.0  ;;  %v303_v47 = vmul.f32 %v298_v41, %v275_v42 }
 0x1b8   :  { %v274_v44 = vsel %vm266_vm10, %v255_v39, %v270_v40  ;;  %v307_v48 = vadd.f32 %v306_v45, %v305_v43 }
 0x1b9   :  { %v302_v46 = vmul.f32 %v293_v29, %v274_v44  ;;  %v310_v51 = vsel %vm304_vm9, %v303_v47, 0.0 }
 0x1bb   :  { %v308_v49 = vsel %vm304_vm9, %v302_v46, 0.0 }
 0x1bc   :  { %v309_v50 = vadd.f32 %v308_v49, %v307_v48 }
 0x1be   :  { %v311_v52 = vadd.f32 %v310_v51, %v309_v50 }
 0x1c0   :  { %v312_v53 = vrot.slane %v311_v52, 4 }
 0x1c2   :  { %v313_v54 = vadd.f32 %v312_v53, %v311_v52 }
 0x1c4   :  { %v314_v55 = vrot.slane %v313_v54, 2 }
 0x1c6   :  { %v315_v56 = vadd.f32 %v314_v55, %v313_v54 }
 0x1c8   :  { %v316_v57 = vrot.slane %v315_v56, 1 }
 0x1ca   :  { %v317_v58 = vadd.f32 %v316_v57, %v315_v56 }
 0x1cc   :  { %v318_v59 = vsub.f32 0.0, %v317_v58 }
 0x1ce   :  { %v319_v60 = vmul.f32 1.442695, %v318_v59 }
 0x1d0   :  { %394 = vpow2.f32 %v319_v60 }
 0x1dd   :  { %v395_v61 = vpop.eup %394 }
 0x1de   :  { %v321_v62 = vadd.f32 1.0, %v395_v61 }
 0x1e0   :  { %396 = vrcp.f32 %v321_v62 }
 0x1ed   :  { %v397_v63 = vpop.eup %396 }
 0x1ee   :  { %325 = vst.msk [vmem:[#allocation7] sm:$0x1] %vm324_vm11, %v397_v63 }
 0x1ef   :  { %449 = shalt.err (!%p446_p0)
}
 0x1f0   :  { %335 = dma.vmem_to_hbm [thread:$0]  %s333_s14, 16, %s536_s4, [#allocation4]  }
 0x1f1   :  { %462 = dma.done.wait [#allocation4], 16  }
 0x1f2   :  { %463 = vsyncadd [#allocation4], 4294967280 }
 0x1f3   :  { %339 = vsyncpa [#allocation3], 1 }
 0x1f4   :  { %340 = vsyncpa [#allocation6], 1 }
 0x1f5   :  { %341 = vsyncpa [#allocation4], 1 }

</bundles_post_ra>
